<compile_context>
chip_gen: v5e
topology: v5e:2x2
jax: 0.10.0
libtpu: 0.0.40
codegen_flags: <defaults>
</compile_context>

<pallas_src>
import jax
import jax.numpy as jnp
from jax.experimental import pallas as pl
from jax.experimental.pallas import tpu as pltpu


def _round_up(x, m):
    return (x + m - 1) // m * m


def lds_kernel(x_ref, a_ref, b_ref, c_ref, h0_ref, o_ref, h_ref, hist_ref):
    """One grid step = one block of T_BLK timesteps for all (padded) batch rows.

    Time-major flat layout, rows ordered (t, b):
      x_ref    : (T_BLK * B_PAD, D_IN)
      hist_ref : (T_BLK * B_PAD, N) f32 scratch; first holds U = X @ B, then is
                 overwritten in-place with the per-step hidden states H.
      h_ref    : (B_PAD, N) f32 scratch; hidden state carried across grid steps.
    """
    b_pad, n = h_ref.shape
    t_blk = hist_ref.shape[0] // b_pad

    # forward() resets h <- h0 (a learnable, zero-initialized parameter).
    @pl.when(pl.program_id(0) == 0)
    def _():
        h_ref[...] = jnp.broadcast_to(h0_ref[...].astype(jnp.float32), (b_pad, n))

    # (1) Hoisted input projection: one big MXU matmul for the whole time block.
    x = x_ref[...]
    w_in = b_ref[...]
    if w_in.dtype != x.dtype:  # trace-time check; keeps bf16 on the MXU when both match
        x, w_in = x.astype(jnp.float32), w_in.astype(jnp.float32)
    hist_ref[...] = jnp.dot(x, w_in, preferred_element_type=jnp.float32)

    a = a_ref[...].astype(jnp.float32)  # keep carried-state math in f32

    # (2) The only serial work: h <- h @ A + U[t]; store h_t into the history.
    def step(t, h):
        r = pl.multiple_of(t * b_pad, b_pad)  # sublane-aligned (b_pad is a mult. of 8)
        h = jnp.dot(h, a, preferred_element_type=jnp.float32) + hist_ref[pl.ds(r, b_pad), :]
        hist_ref[pl.ds(r, b_pad), :] = h
        return h

    h_ref[...] = jax.lax.fori_loop(0, t_blk, step, h_ref[...],
                                   unroll=min(t_blk, 8))

    # (3) Batched output projection + one dense store of the whole block.
    o_ref[...] = jnp.dot(hist_ref[...], c_ref[...].astype(jnp.float32),
                         preferred_element_type=jnp.float32).astype(o_ref.dtype)


def lds_forward(inputs, A, B_mat, C_mat, h0=None, *, t_blk=None):
    """inputs: [batch, seq, input_dim] -> outputs: [batch, seq, output_dim]."""
    bsz, seq_len, d_in = inputs.shape
    state_dim = A.shape[0]
    d_out = C_mat.shape[1]
    if h0 is None:
        h0 = jnp.zeros((state_dim,), dtype=A.dtype)

    if t_blk is None:
        # Amortize per-grid-step overhead over many timesteps; the cap keeps the
        # f32 history scratch comfortably inside v7x's 64 MiB VMEM (and v5e/v6e's
        # 128 MiB) at typical state dims.
        t_blk = min(_round_up(seq_len, 8), 128)

    t_pad = _round_up(seq_len, t_blk)
    b_pad = _round_up(bsz, 8)  # sublane-aligned rows -> unmasked loads/stores

    x = inputs
    if (t_pad, b_pad) != (seq_len, bsz):
        # Zero-pad time at the END (doesn't affect earlier states) and batch
        # (independent rows, sliced off below).
        x = jnp.pad(x, ((0, b_pad - bsz), (0, t_pad - seq_len), (0, 0)))

    # Single transpose of the (narrow, D_in-wide) input to time-major; the flat
    # [T*B, D] 2-D view makes every in-kernel op an aligned dense tile op.
    x_flat = jnp.transpose(x, (1, 0, 2)).reshape(t_pad * b_pad, d_in)
    h0_2d = h0.reshape(1, state_dim)

    rows = t_blk * b_pad
    grid = (t_pad // t_blk,)

    out_flat = pl.pallas_call(
        lds_kernel,
        out_shape=jax.ShapeDtypeStruct((t_pad * b_pad, d_out), inputs.dtype),
        grid_spec=pltpu.PrefetchScalarGridSpec(
            num_scalar_prefetch=0,
            grid=grid,
            in_specs=[
                pl.BlockSpec((rows, d_in), lambda tb: (tb, 0)),
                pl.BlockSpec((state_dim, state_dim), lambda tb: (0, 0)),
                pl.BlockSpec((d_in, state_dim), lambda tb: (0, 0)),
                pl.BlockSpec((state_dim, d_out), lambda tb: (0, 0)),
                pl.BlockSpec((1, state_dim), lambda tb: (0, 0)),
            ],
            out_specs=pl.BlockSpec((rows, d_out), lambda tb: (tb, 0)),
            scratch_shapes=[
                pltpu.VMEM((b_pad, state_dim), jnp.float32),   # carried hidden state
                pltpu.VMEM((rows, state_dim), jnp.float32),    # U / H history
            ],
        ),
        compiler_params=pltpu.CompilerParams(
            dimension_semantics=("arbitrary",),  # time recurrence is sequential
        ),
    )(x_flat, A, B_mat, C_mat, h0_2d)

    y = out_flat.reshape(t_pad, b_pad, d_out)
    return jnp.transpose(y, (1, 0, 2))[:bsz, :seq_len, :]


def init_lds_params(key, state_dim, input_dim, output_dim, dtype=jnp.float32):
    """Deterministic parameter init mirroring the PyTorch __init__."""
    kA, kB, kC = jax.random.split(key, 3)
    A_init = jax.random.normal(kA, (state_dim, state_dim), dtype=jnp.float32)
    s = jnp.linalg.svd(A_init, compute_uv=False)  # s[0] == largest singular value
    A = (A_init / (s[0] + 1e-8)).astype(dtype)
    B = (jax.random.normal(kB, (input_dim, state_dim), dtype=jnp.float32)
         / input_dim).astype(dtype)
    C = (jax.random.normal(kC, (state_dim, output_dim), dtype=jnp.float32)
         / state_dim).astype(dtype)
    return A, B, C


def lds_reference(inputs, A, B_mat, C_mat, h0=None):
    """Pure-JAX reference (scan over time) for correctness checking."""
    bsz = inputs.shape[0]
    if h0 is None:
        h0 = jnp.zeros((A.shape[0],), dtype=jnp.float32)
    h_init = jnp.broadcast_to(h0.astype(jnp.float32), (bsz, A.shape[0]))

    def step(h, x_t):
        h_new = h @ A + x_t @ B_mat
        return h_new, h_new @ C_mat

    x_tm = jnp.transpose(inputs, (1, 0, 2))
    _, y_tm = jax.lax.scan(step, h_init, x_tm)
    return jnp.transpose(y_tm, (1, 0, 2)).astype(inputs.dtype)


if __name__ == "__main__":
    # Small shapes consistent with the module's forward contract.
    batch = 2
    seq_len = 8
    input_dim = 4
    state_dim = 32
    output_dim = 4

    key = jax.random.PRNGKey(0)
    kparams, kx = jax.random.split(key)

    A, B_mat, C_mat = init_lds_params(kparams, state_dim, input_dim, output_dim)
    x = jax.random.normal(kx, (batch, seq_len, input_dim), dtype=jnp.float32)

    y = lds_forward(x, A, B_mat, C_mat)
    y = jax.block_until_ready(y)

    y_ref = lds_reference(x, A, B_mat, C_mat)
    assert y.shape == (batch, seq_len, output_dim), y.shape
    assert jnp.allclose(y, y_ref, rtol=1e-4, atol=1e-4), (
        float(jnp.max(jnp.abs(y - y_ref)))
    )

    print("KERNEL_OK")
</pallas_src>

<mosaic_0001>
module attributes {stable_mosaic.version = 11 : i64} {
  func.func @lds_kernel(%arg0: i32, %arg1: memref<64x4xf32, #tpu.memory_space<vmem>>, %arg2: memref<32x32xf32, #tpu.memory_space<vmem>>, %arg3: memref<4x32xf32, #tpu.memory_space<vmem>>, %arg4: memref<32x4xf32, #tpu.memory_space<vmem>>, %arg5: memref<1x32xf32, #tpu.memory_space<vmem>>, %arg6: memref<64x4xf32, #tpu.memory_space<vmem>>, %arg7: memref<8x32xf32, #tpu.memory_space<vmem>>, %arg8: memref<64x32xf32, #tpu.memory_space<vmem>>) attributes {dimension_semantics = [#tpu.dimension_semantics<arbitrary>], iteration_bounds = array<i64: 1>, scalar_prefetch = 0 : i64, scratch_operands = 2 : i64, tpu.core_type = #tpu.core_type<tc>, window_params = [{transform_indices = @transform_0, window_bounds = array<i64: 64, 4>}, {pipeline_mode = #tpu.pipeline_mode<synchronous>, transform_indices = @transform_1, window_bounds = array<i64: 32, 32>}, {pipeline_mode = #tpu.pipeline_mode<synchronous>, transform_indices = @transform_2, window_bounds = array<i64: 4, 32>}, {pipeline_mode = #tpu.pipeline_mode<synchronous>, transform_indices = @transform_3, window_bounds = array<i64: 32, 4>}, {pipeline_mode = #tpu.pipeline_mode<synchronous>, transform_indices = @transform_4, window_bounds = array<i64: 1, 32>}, {transform_indices = @transform_5, window_bounds = array<i64: 64, 4>}]} {
    %c0_i32 = arith.constant 0 : i32
    %0 = arith.cmpi eq, %arg0, %c0_i32 : i32
    %1 = arith.extui %0 : i1 to i32
    %c0_i32_0 = arith.constant 0 : i32
    %2 = arith.cmpi ne, %1, %c0_i32_0 : i32
    scf.if %2 {
      %c0_52 = arith.constant 0 : index
      %c0_53 = arith.constant 0 : index
      %78 = vector.load %arg5[%c0_52, %c0_53] : memref<1x32xf32, #tpu.memory_space<vmem>>, vector<1x32xf32>
      %79 = vector.shape_cast %78 : vector<1x32xf32> to vector<1x32xf32>
      %80 = vector.broadcast %79 : vector<1x32xf32> to vector<8x32xf32>
      %c0_54 = arith.constant 0 : index
      %c0_55 = arith.constant 0 : index
      %81 = vector.load %arg7[%c0_54, %c0_55] : memref<8x32xf32, #tpu.memory_space<vmem>>, vector<8x32xf32>
      tpu.vector_store %arg7[%c0_54, %c0_55], %80 {strides = array<i32>} : memref<8x32xf32, #tpu.memory_space<vmem>>, vector<8x32xf32>,
    } else {
    }
    %c0 = arith.constant 0 : index
    %c0_1 = arith.constant 0 : index
    %3 = vector.load %arg1[%c0, %c0_1] : memref<64x4xf32, #tpu.memory_space<vmem>>, vector<64x4xf32>
    %c0_2 = arith.constant 0 : index
    %c0_3 = arith.constant 0 : index
    %4 = vector.load %arg3[%c0_2, %c0_3] : memref<4x32xf32, #tpu.memory_space<vmem>>, vector<4x32xf32>
    %cst = arith.constant dense<0.000000e+00> : vector<64x32xf32>
    %5 = tpu.matmul %3, %4, %cst {dimension_numbers = #tpu.dot_dimension_numbers<[1], [0], [0], [1], [0, 0, 1, 1], [], []>} : vector<64x4xf32>, vector<4x32xf32>, vector<64x32xf32> -> vector<64x32xf32>
    %c0_4 = arith.constant 0 : index
    %c0_5 = arith.constant 0 : index
    %6 = vector.load %arg8[%c0_4, %c0_5] : memref<64x32xf32, #tpu.memory_space<vmem>>, vector<64x32xf32>
    tpu.vector_store %arg8[%c0_4, %c0_5], %5 {strides = array<i32>} : memref<64x32xf32, #tpu.memory_space<vmem>>, vector<64x32xf32>,
    %c0_6 = arith.constant 0 : index
    %c0_7 = arith.constant 0 : index
    %7 = vector.load %arg2[%c0_6, %c0_7] : memref<32x32xf32, #tpu.memory_space<vmem>>, vector<32x32xf32>
    %c0_8 = arith.constant 0 : index
    %c0_9 = arith.constant 0 : index
    %8 = vector.load %arg7[%c0_8, %c0_9] : memref<8x32xf32, #tpu.memory_space<vmem>>, vector<8x32xf32>
    %c0_i32_10 = arith.constant 0 : i32
    %c8_i32 = arith.constant 8 : i32
    %9 = arith.muli %c0_i32_10, %c8_i32 : i32
    %10 = tpu.assume_multiple %9, 8 : i32
    %cst_11 = arith.constant dense<0.000000e+00> : vector<8x32xf32>
    %11 = tpu.matmul %8, %7, %cst_11 {dimension_numbers = #tpu.dot_dimension_numbers<[1], [0], [0], [1], [0, 0, 1, 1], [], []>} : vector<8x32xf32>, vector<32x32xf32>, vector<8x32xf32> -> vector<8x32xf32>
    %12 = arith.index_cast %10 : i32 to index
    %c0_12 = arith.constant 0 : index
    %13 = vector.load %arg8[%12, %c0_12] : memref<64x32xf32, #tpu.memory_space<vmem>>, vector<8x32xf32>
    %14 = arith.addf %11, %13 : vector<8x32xf32>
    %15 = arith.index_cast %10 : i32 to index
    %c0_13 = arith.constant 0 : index
    %16 = vector.load %arg8[%15, %c0_13] : memref<64x32xf32, #tpu.memory_space<vmem>>, vector<8x32xf32>
    tpu.vector_store %arg8[%15, %c0_13], %14 {strides = array<i32>} : memref<64x32xf32, #tpu.memory_space<vmem>>, vector<8x32xf32>,
    %c1_i32 = arith.constant 1 : i32
    %c8_i32_14 = arith.constant 8 : i32
    %17 = arith.muli %c1_i32, %c8_i32_14 : i32
    %18 = tpu.assume_multiple %17, 8 : i32
    %cst_15 = arith.constant dense<0.000000e+00> : vector<8x32xf32>
    %19 = tpu.matmul %14, %7, %cst_15 {dimension_numbers = #tpu.dot_dimension_numbers<[1], [0], [0], [1], [0, 0, 1, 1], [], []>} : vector<8x32xf32>, vector<32x32xf32>, vector<8x32xf32> -> vector<8x32xf32>
    %20 = arith.index_cast %18 : i32 to index
    %c0_16 = arith.constant 0 : index
    %21 = vector.load %arg8[%20, %c0_16] : memref<64x32xf32, #tpu.memory_space<vmem>>, vector<8x32xf32>
    %22 = arith.addf %19, %21 : vector<8x32xf32>
    %23 = arith.index_cast %18 : i32 to index
    %c0_17 = arith.constant 0 : index
    %24 = vector.load %arg8[%23, %c0_17] : memref<64x32xf32, #tpu.memory_space<vmem>>, vector<8x32xf32>
    tpu.vector_store %arg8[%23, %c0_17], %22 {strides = array<i32>} : memref<64x32xf32, #tpu.memory_space<vmem>>, vector<8x32xf32>,
    %c2_i32 = arith.constant 2 : i32
    %c8_i32_18 = arith.constant 8 : i32
    %25 = arith.muli %c2_i32, %c8_i32_18 : i32
    %26 = tpu.assume_multiple %25, 8 : i32
    %cst_19 = arith.constant dense<0.000000e+00> : vector<8x32xf32>
    %27 = tpu.matmul %22, %7, %cst_19 {dimension_numbers = #tpu.dot_dimension_numbers<[1], [0], [0], [1], [0, 0, 1, 1], [], []>} : vector<8x32xf32>, vector<32x32xf32>, vector<8x32xf32> -> vector<8x32xf32>
    %28 = arith.index_cast %26 : i32 to index
    %c0_20 = arith.constant 0 : index
    %29 = vector.load %arg8[%28, %c0_20] : memref<64x32xf32, #tpu.memory_space<vmem>>, vector<8x32xf32>
    %30 = arith.addf %27, %29 : vector<8x32xf32>
    %31 = arith.index_cast %26 : i32 to index
    %c0_21 = arith.constant 0 : index
    %32 = vector.load %arg8[%31, %c0_21] : memref<64x32xf32, #tpu.memory_space<vmem>>, vector<8x32xf32>
    tpu.vector_store %arg8[%31, %c0_21], %30 {strides = array<i32>} : memref<64x32xf32, #tpu.memory_space<vmem>>, vector<8x32xf32>,
    %c3_i32 = arith.constant 3 : i32
    %c8_i32_22 = arith.constant 8 : i32
    %33 = arith.muli %c3_i32, %c8_i32_22 : i32
    %34 = tpu.assume_multiple %33, 8 : i32
    %cst_23 = arith.constant dense<0.000000e+00> : vector<8x32xf32>
    %35 = tpu.matmul %30, %7, %cst_23 {dimension_numbers = #tpu.dot_dimension_numbers<[1], [0], [0], [1], [0, 0, 1, 1], [], []>} : vector<8x32xf32>, vector<32x32xf32>, vector<8x32xf32> -> vector<8x32xf32>
    %36 = arith.index_cast %34 : i32 to index
    %c0_24 = arith.constant 0 : index
    %37 = vector.load %arg8[%36, %c0_24] : memref<64x32xf32, #tpu.memory_space<vmem>>, vector<8x32xf32>
    %38 = arith.addf %35, %37 : vector<8x32xf32>
    %39 = arith.index_cast %34 : i32 to index
    %c0_25 = arith.constant 0 : index
    %40 = vector.load %arg8[%39, %c0_25] : memref<64x32xf32, #tpu.memory_space<vmem>>, vector<8x32xf32>
    tpu.vector_store %arg8[%39, %c0_25], %38 {strides = array<i32>} : memref<64x32xf32, #tpu.memory_space<vmem>>, vector<8x32xf32>,
    %c4_i32 = arith.constant 4 : i32
    %c8_i32_26 = arith.constant 8 : i32
    %41 = arith.muli %c4_i32, %c8_i32_26 : i32
    %42 = tpu.assume_multiple %41, 8 : i32
    %cst_27 = arith.constant dense<0.000000e+00> : vector<8x32xf32>
    %43 = tpu.matmul %38, %7, %cst_27 {dimension_numbers = #tpu.dot_dimension_numbers<[1], [0], [0], [1], [0, 0, 1, 1], [], []>} : vector<8x32xf32>, vector<32x32xf32>, vector<8x32xf32> -> vector<8x32xf32>
    %44 = arith.index_cast %42 : i32 to index
    %c0_28 = arith.constant 0 : index
    %45 = vector.load %arg8[%44, %c0_28] : memref<64x32xf32, #tpu.memory_space<vmem>>, vector<8x32xf32>
    %46 = arith.addf %43, %45 : vector<8x32xf32>
    %47 = arith.index_cast %42 : i32 to index
    %c0_29 = arith.constant 0 : index
    %48 = vector.load %arg8[%47, %c0_29] : memref<64x32xf32, #tpu.memory_space<vmem>>, vector<8x32xf32>
    tpu.vector_store %arg8[%47, %c0_29], %46 {strides = array<i32>} : memref<64x32xf32, #tpu.memory_space<vmem>>, vector<8x32xf32>,
    %c5_i32 = arith.constant 5 : i32
    %c8_i32_30 = arith.constant 8 : i32
    %49 = arith.muli %c5_i32, %c8_i32_30 : i32
    %50 = tpu.assume_multiple %49, 8 : i32
    %cst_31 = arith.constant dense<0.000000e+00> : vector<8x32xf32>
    %51 = tpu.matmul %46, %7, %cst_31 {dimension_numbers = #tpu.dot_dimension_numbers<[1], [0], [0], [1], [0, 0, 1, 1], [], []>} : vector<8x32xf32>, vector<32x32xf32>, vector<8x32xf32> -> vector<8x32xf32>
    %52 = arith.index_cast %50 : i32 to index
    %c0_32 = arith.constant 0 : index
    %53 = vector.load %arg8[%52, %c0_32] : memref<64x32xf32, #tpu.memory_space<vmem>>, vector<8x32xf32>
    %54 = arith.addf %51, %53 : vector<8x32xf32>
    %55 = arith.index_cast %50 : i32 to index
    %c0_33 = arith.constant 0 : index
    %56 = vector.load %arg8[%55, %c0_33] : memref<64x32xf32, #tpu.memory_space<vmem>>, vector<8x32xf32>
    tpu.vector_store %arg8[%55, %c0_33], %54 {strides = array<i32>} : memref<64x32xf32, #tpu.memory_space<vmem>>, vector<8x32xf32>,
    %c6_i32 = arith.constant 6 : i32
    %c8_i32_34 = arith.constant 8 : i32
    %57 = arith.muli %c6_i32, %c8_i32_34 : i32
    %58 = tpu.assume_multiple %57, 8 : i32
    %cst_35 = arith.constant dense<0.000000e+00> : vector<8x32xf32>
    %59 = tpu.matmul %54, %7, %cst_35 {dimension_numbers = #tpu.dot_dimension_numbers<[1], [0], [0], [1], [0, 0, 1, 1], [], []>} : vector<8x32xf32>, vector<32x32xf32>, vector<8x32xf32> -> vector<8x32xf32>
    %60 = arith.index_cast %58 : i32 to index
    %c0_36 = arith.constant 0 : index
    %61 = vector.load %arg8[%60, %c0_36] : memref<64x32xf32, #tpu.memory_space<vmem>>, vector<8x32xf32>
    %62 = arith.addf %59, %61 : vector<8x32xf32>
    %63 = arith.index_cast %58 : i32 to index
    %c0_37 = arith.constant 0 : index
    %64 = vector.load %arg8[%63, %c0_37] : memref<64x32xf32, #tpu.memory_space<vmem>>, vector<8x32xf32>
    tpu.vector_store %arg8[%63, %c0_37], %62 {strides = array<i32>} : memref<64x32xf32, #tpu.memory_space<vmem>>, vector<8x32xf32>,
    %c7_i32 = arith.constant 7 : i32
    %c8_i32_38 = arith.constant 8 : i32
    %65 = arith.muli %c7_i32, %c8_i32_38 : i32
    %66 = tpu.assume_multiple %65, 8 : i32
    %cst_39 = arith.constant dense<0.000000e+00> : vector<8x32xf32>
    %67 = tpu.matmul %62, %7, %cst_39 {dimension_numbers = #tpu.dot_dimension_numbers<[1], [0], [0], [1], [0, 0, 1, 1], [], []>} : vector<8x32xf32>, vector<32x32xf32>, vector<8x32xf32> -> vector<8x32xf32>
    %68 = arith.index_cast %66 : i32 to index
    %c0_40 = arith.constant 0 : index
    %69 = vector.load %arg8[%68, %c0_40] : memref<64x32xf32, #tpu.memory_space<vmem>>, vector<8x32xf32>
    %70 = arith.addf %67, %69 : vector<8x32xf32>
    %71 = arith.index_cast %66 : i32 to index
    %c0_41 = arith.constant 0 : index
    %72 = vector.load %arg8[%71, %c0_41] : memref<64x32xf32, #tpu.memory_space<vmem>>, vector<8x32xf32>
    tpu.vector_store %arg8[%71, %c0_41], %70 {strides = array<i32>} : memref<64x32xf32, #tpu.memory_space<vmem>>, vector<8x32xf32>,
    %c8_i32_42 = arith.constant 8 : i32
    %c0_43 = arith.constant 0 : index
    %c0_44 = arith.constant 0 : index
    %73 = vector.load %arg7[%c0_43, %c0_44] : memref<8x32xf32, #tpu.memory_space<vmem>>, vector<8x32xf32>
    tpu.vector_store %arg7[%c0_43, %c0_44], %70 {strides = array<i32>} : memref<8x32xf32, #tpu.memory_space<vmem>>, vector<8x32xf32>,
    %c0_45 = arith.constant 0 : index
    %c0_46 = arith.constant 0 : index
    %74 = vector.load %arg8[%c0_45, %c0_46] : memref<64x32xf32, #tpu.memory_space<vmem>>, vector<64x32xf32>
    %c0_47 = arith.constant 0 : index
    %c0_48 = arith.constant 0 : index
    %75 = vector.load %arg4[%c0_47, %c0_48] : memref<32x4xf32, #tpu.memory_space<vmem>>, vector<32x4xf32>
    %cst_49 = arith.constant dense<0.000000e+00> : vector<64x4xf32>
    %76 = tpu.matmul %74, %75, %cst_49 {dimension_numbers = #tpu.dot_dimension_numbers<[1], [0], [0], [1], [0, 0, 1, 1], [], []>} : vector<64x32xf32>, vector<32x4xf32>, vector<64x4xf32> -> vector<64x4xf32>
    %c0_50 = arith.constant 0 : index
    %c0_51 = arith.constant 0 : index
    %77 = vector.load %arg6[%c0_50, %c0_51] : memref<64x4xf32, #tpu.memory_space<vmem>>, vector<64x4xf32>
    tpu.vector_store %arg6[%c0_50, %c0_51], %76 {strides = array<i32>} : memref<64x4xf32, #tpu.memory_space<vmem>>, vector<64x4xf32>,
    return
  }
  func.func @transform_0(%arg0: i32) -> (i32, i32) {
    %c0_i32 = arith.constant 0 : i32
    %c0_i32_0 = arith.constant 0 : i32
    return %arg0, %c0_i32 : i32, i32
  }
  func.func @transform_1(%arg0: i32) -> (i32, i32) {
    %c0_i32 = arith.constant 0 : i32
    %c0_i32_0 = arith.constant 0 : i32
    %c0_i32_1 = arith.constant 0 : i32
    return %c0_i32, %c0_i32_0 : i32, i32
  }
  func.func @transform_2(%arg0: i32) -> (i32, i32) {
    %c0_i32 = arith.constant 0 : i32
    %c0_i32_0 = arith.constant 0 : i32
    %c0_i32_1 = arith.constant 0 : i32
    return %c0_i32, %c0_i32_0 : i32, i32
  }
  func.func @transform_3(%arg0: i32) -> (i32, i32) {
    %c0_i32 = arith.constant 0 : i32
    %c0_i32_0 = arith.constant 0 : i32
    %c0_i32_1 = arith.constant 0 : i32
    return %c0_i32, %c0_i32_0 : i32, i32
  }
  func.func @transform_4(%arg0: i32) -> (i32, i32) {
    %c0_i32 = arith.constant 0 : i32
    %c0_i32_0 = arith.constant 0 : i32
    %c0_i32_1 = arith.constant 0 : i32
    return %c0_i32, %c0_i32_0 : i32, i32
  }
  func.func @transform_5(%arg0: i32) -> (i32, i32) {
    %c0_i32 = arith.constant 0 : i32
    %c0_i32_0 = arith.constant 0 : i32
    return %arg0, %c0_i32 : i32, i32
  }
}

</mosaic_0001>

<bundles_post_ra>
// kernel: tpu_custom_call.1
= control target key start
LH: loop header
LB: loop body
LE: loop exit
PB: predicated region body
PF: predicated region fallthrough
CT: control target
= control target key end

     0   :  { %vm64_vm0 = vcmask 1043456   ;;  %vm39_vm1 = vcmask 31744   ;;  %vm28_vm2 = vcmask 261120   ;;  %s609_s2 = inlined_call_operand.vmem [shape: f32[4,32], index: 2, kind: input, shape index: {}]   ;;  %s610_s0 = inlined_call_operand.vmem [shape: f32[64,4], index: 0, kind: input, shape index: {}]   ;;  %s611_s1 = inlined_call_operand.vmem [shape: f32[32,32], index: 1, kind: input, shape index: {}]   ;;  %s612_s4 = inlined_call_operand.vmem [shape: f32[1,32], index: 4, kind: input, shape index: {}]   ;;  %s613_s3 = inlined_call_operand.vmem [shape: f32[32,4], index: 3, kind: input, shape index: {}]   ;;  %s614_s5 = inlined_call_operand.vmem [shape: f32[64,4], index: 5, kind: output, shape index: {}]  }
   0x1   :  { %v38_v0 = vld [vmem:[%s609_s2] sm:$0xf]  ;;  %v37_v1 = vld [vmem:[%s610_s0 + $0x38] sm:$0xff]  ;;  %v120_v4 = vld [vmem:[%s611_s1 + $0x10] sm:$0xff] }
   0x2   :  { %v121_v2 = vld [vmem:[%s611_s1 + $0x18] sm:$0xff]  ;;  %445 = vmatpush.msk.msra.mxu2 %vm64_vm0, %v38_v0  ;;  %420 = vmatpush.msk.msra.mxu0 %vm64_vm0, %v38_v0  ;;  %v30_v3 = vld [vmem:[%s610_s0] sm:$0xff]  ;;  %v119_v6 = vld [vmem:[%s611_s1 + $0x8] sm:$0xff] }
   0x3   :  { %428 = vmatmul.msk.f32.vlgmr.msra.gmra.mxu2 %vm39_vm1, %v37_v1  ;;  %421 = vmatmul.msk.f32.vlgmr.msra.gmra.mxu0 %vm39_vm1, %v30_v3  ;;  %v450_v5 = vld [vmem:[%s612_s4] ss:$0 sm:$0xff]  ;;  %v31_v9 = vld [vmem:[%s610_s0 + $0x8] sm:$0xff]  ;;  %v32_v16 = vld [vmem:[%s610_s0 + $0x10] sm:$0xff] }
   0x4   :  { %139 = vmatpush.msrb.mxu2 %v121_v2  ;;  %191 = vmatpush.msra.mxu3 %v121_v2  ;;  %29 = vst.msk [vmem:[#allocation2] sm:$0xff] %vm28_vm2, %v450_v5  ;;  %v118_v7 = vld [vmem:[%s611_s1] sm:$0xff]  ;;  %v33_v20 = vld [vmem:[%s610_s0 + $0x18] sm:$0xff]  ;;  %v35_v31 = vld [vmem:[%s610_s0 + $0x28] sm:$0xff] }
   0x5   :  { %217 = vmatpush.msra.mxu1 %v121_v2  ;;  %v34_v26 = vld [vmem:[%s610_s0 + $0x20] sm:$0xff]  ;;  %v342_v32 = vld [vmem:[%s613_s3 + $0x18] sm:$0xff]  ;;  %v341_v33 = vld [vmem:[%s613_s3 + $0x10] sm:$0xff] }
   0x6   :  { %140 = vmatpush.msrb.mxu2 %v120_v4  ;;  %192 = vmatpush.msra.mxu3 %v120_v4  ;;  %v340_v34 = vld [vmem:[%s613_s3 + $0x8] sm:$0xff]  ;;  %v339_v35 = vld [vmem:[%s613_s3] sm:$0xff]  ;;  %v36_v40 = vld [vmem:[%s610_s0 + $0x30] sm:$0xff] }
   0x7   :  { %218 = vmatpush.msra.mxu1 %v120_v4 }
   0x8   :  { %141 = vmatpush.msrb.mxu2 %v119_v6  ;;  %193 = vmatpush.msra.mxu3 %v119_v6 }
   0x9   :  { %219 = vmatpush.msra.mxu1 %v119_v6 }
   0xa   :  { %142 = vmatpush.msrb.mxu2 %v118_v7  ;;  %194 = vmatpush.msra.mxu3 %v118_v7 }
   0xb   :  { %220 = vmatpush.msra.mxu1 %v118_v7  ;;  %v122_v8 = vld [vmem:[#allocation2] sm:$0xff]  ;;  %422 = vmatmul.msk.f32.gmra.mxu0 %vm39_vm1, %v31_v9 }
   0xc   :  { %165 = vmatpush.msra.mxu2 %v121_v2  ;;  %269 = vmatpush.msrb.mxu3 %v121_v2 }
   0xd   :  { %295 = vmatpush.msrb.mxu1 %v121_v2  ;;  %429 = vmatmul.msk.f32.vlgmr.msrb.gmra.mxu2 %vm28_vm2, %v122_v8 }
   0xe   :  { %166 = vmatpush.msra.mxu2 %v120_v4  ;;  %270 = vmatpush.msrb.mxu3 %v120_v4 }
   0xf   :  { %296 = vmatpush.msrb.mxu1 %v120_v4 }
  0x10   :  { %167 = vmatpush.msra.mxu2 %v119_v6  ;;  %271 = vmatpush.msrb.mxu3 %v119_v6 }
  0x11   :  { %297 = vmatpush.msrb.mxu1 %v119_v6 }
  0x12   :  { %168 = vmatpush.msra.mxu2 %v118_v7  ;;  %272 = vmatpush.msrb.mxu3 %v118_v7 }
  0x13   :  { %298 = vmatpush.msrb.mxu1 %v118_v7  ;;  %423 = vmatmul.msk.f32.gmra.mxu0 %vm39_vm1, %v32_v16 }
  0x14   :  { %243 = vmatpush.msrb.mxu2 %v121_v2 }
  0x16   :  { %244 = vmatpush.msrb.mxu2 %v120_v4 }
  0x18   :  { %245 = vmatpush.msrb.mxu2 %v119_v6 }
  0x1a   :  { %246 = vmatpush.msrb.mxu2 %v118_v7 }
  0x1b   :  { %424 = vmatmul.msk.f32.gmra.mxu0 %vm39_vm1, %v33_v20 }
  0x23   :  { %425 = vmatmul.msk.f32.gmra.mxu0 %vm39_vm1, %v34_v26 }
  0x2b   :  { %426 = vmatmul.msk.f32.gmra.mxu0 %vm39_vm1, %v35_v31 }
  0x33   :  { %427 = vmatmul.msk.f32.gmra.mxu0 %vm39_vm1, %v36_v40 }
  0x80   :  { %v85_v10 = vpop.f32.mrf.mxu0 }
  0x81   :  { %110 = vst.msk [vmem:[#allocation3] sm:$0xff] %vm28_vm2, %v85_v10 }
  0x86   :  { %v106_v11 = vpop.f32.mrf.mxu2 }
  0x87   :  { %117 = vst.msk [vmem:[#allocation3 + $0x38] sm:$0xff] %vm28_vm2, %v106_v11 }
  0x88   :  { %v123_v12 = vld [vmem:[#allocation3] sm:$0xff]  ;;  %v88_v15 = vpop.f32.mrf.mxu0 }
  0x89   :  { %111 = vst.msk [vmem:[#allocation3 + $0x8] sm:$0xff] %vm28_vm2, %v88_v15 }
  0x8e   :  { %v305_v61 = vld [vmem:[#allocation3 + $0x38] sm:$0xff] }
  0x90   :  { %v144_v13 = vpop.f32.mrf.mxu2  ;;  %v149_v17 = vld [vmem:[#allocation3 + $0x8] sm:$0xff]  ;;  %v91_v21 = vpop.f32.mrf.mxu0 }
  0x91   :  { %v145_v14 = vadd.f32 %v144_v13, %v123_v12  ;;  %112 = vst.msk [vmem:[#allocation3 + $0x10] sm:$0xff] %vm28_vm2, %v91_v21 }
  0x93   :  { %147 = vst.msk [vmem:[#allocation3] sm:$0xff] %vm28_vm2, %v145_v14  ;;  %430 = vmatmul.msk.f32.vlgmr.msra.gmra.mxu2 %vm28_vm2, %v145_v14 }
  0x94   :  { %321 = vmatpush.msra.mxu2 %v121_v2 }
  0x96   :  { %322 = vmatpush.msra.mxu2 %v120_v4 }
  0x98   :  { %323 = vmatpush.msra.mxu2 %v119_v6  ;;  %v175_v22 = vld [vmem:[#allocation3 + $0x10] sm:$0xff]  ;;  %v94_v25 = vpop.f32.mrf.mxu0 }
  0x99   :  { %113 = vst.msk [vmem:[#allocation3 + $0x18] sm:$0xff] %vm28_vm2, %v94_v25 }
  0x9a   :  { %324 = vmatpush.msra.mxu2 %v118_v7  ;;  %v331_v46 = vld [vmem:[#allocation3] sm:$0xff] }
  0xa0   :  { %v201_v27 = vld [vmem:[#allocation3 + $0x18] sm:$0xff]  ;;  %v97_v30 = vpop.f32.mrf.mxu0 }
  0xa1   :  { %114 = vst.msk [vmem:[#allocation3 + $0x20] sm:$0xff] %vm28_vm2, %v97_v30 }
  0xa8   :  { %v227_v36 = vld [vmem:[#allocation3 + $0x20] sm:$0xff]  ;;  %v100_v41 = vpop.f32.mrf.mxu0 }
  0xa9   :  { %115 = vst.msk [vmem:[#allocation3 + $0x28] sm:$0xff] %vm28_vm2, %v100_v41 }
  0xb0   :  { %v253_v42 = vld [vmem:[#allocation3 + $0x28] sm:$0xff]  ;;  %v103_v51 = vpop.f32.mrf.mxu0 }
  0xb1   :  { %116 = vst.msk [vmem:[#allocation3 + $0x30] sm:$0xff] %vm28_vm2, %v103_v51 }
  0xb8   :  { %v279_v52 = vld [vmem:[#allocation3 + $0x30] sm:$0xff] }
 0x116   :  { %v170_v18 = vpop.f32.mrf.mxu2 }
 0x117   :  { %v171_v19 = vadd.f32 %v170_v18, %v149_v17 }
 0x119   :  { %173 = vst.msk [vmem:[#allocation3 + $0x8] sm:$0xff] %vm28_vm2, %v171_v19  ;;  %431 = vmatmul.msk.f32.vlgmr.msra.gmra.mxu3 %vm28_vm2, %v171_v19 }
 0x11a   :  { %446 = vmatpush.msra.mxu3 %v342_v32 }
 0x11c   :  { %447 = vmatpush.msra.mxu3 %v341_v33 }
 0x11e   :  { %448 = vmatpush.msra.mxu3 %v340_v34 }
 0x120   :  { %449 = vmatpush.msra.mxu3 %v339_v35  ;;  %v332_v48 = vld [vmem:[#allocation3 + $0x8] sm:$0xff] }
 0x19c   :  { %v196_v23 = vpop.f32.mrf.mxu3 }
 0x19d   :  { %v197_v24 = vadd.f32 %v196_v23, %v175_v22 }
 0x19f   :  { %199 = vst.msk [vmem:[#allocation3 + $0x10] sm:$0xff] %vm28_vm2, %v197_v24  ;;  %432 = vmatmul.msk.f32.vlgmr.msra.gmra.mxu1 %vm28_vm2, %v197_v24 }
 0x1a0   :  { %379 = vmatpush.msra.mxu1 %v342_v32 }
 0x1a2   :  { %380 = vmatpush.msra.mxu1 %v341_v33 }
 0x1a4   :  { %381 = vmatpush.msra.mxu1 %v340_v34 }
 0x1a6   :  { %382 = vmatpush.msra.mxu1 %v339_v35  ;;  %v333_v49 = vld [vmem:[#allocation3 + $0x10] sm:$0xff] }
 0x21c   :  { %v222_v28 = vpop.f32.mrf.mxu1 }
 0x21d   :  { %v223_v29 = vadd.f32 %v222_v28, %v201_v27 }
 0x21f   :  { %225 = vst.msk [vmem:[#allocation3 + $0x18] sm:$0xff] %vm28_vm2, %v223_v29  ;;  %433 = vmatmul.msk.f32.vlgmr.msrb.gmra.mxu2 %vm28_vm2, %v223_v29 }
 0x226   :  { %v334_v50 = vld [vmem:[#allocation3 + $0x18] sm:$0xff] }
 0x2a2   :  { %v248_v37 = vpop.f32.mrf.mxu2 }
 0x2a3   :  { %v249_v38 = vadd.f32 %v248_v37, %v227_v36 }
 0x2a5   :  { %251 = vst.msk [vmem:[#allocation3 + $0x20] sm:$0xff] %vm28_vm2, %v249_v38  ;;  %434 = vmatmul.msk.f32.vlgmr.msrb.gmra.mxu3 %vm28_vm2, %v249_v38 }
 0x2ac   :  { %v335_v39 = vld [vmem:[#allocation3 + $0x20] sm:$0xff] }
 0x2ad   :  { %441 = vmatmul.msk.f32.vlgmr.msra.gmra.mxu3 %vm28_vm2, %v335_v39 }
 0x328   :  { %v274_v43 = vpop.f32.mrf.mxu3 }
 0x329   :  { %v275_v44 = vadd.f32 %v274_v43, %v253_v42 }
 0x32b   :  { %277 = vst.msk [vmem:[#allocation3 + $0x28] sm:$0xff] %vm28_vm2, %v275_v44  ;;  %435 = vmatmul.msk.f32.vlgmr.msrb.gmra.mxu1 %vm28_vm2, %v275_v44 }
 0x330   :  { %v396_v45 = vpop.f32.mrf.mxu3 }
 0x331   :  { %412 = vst.msk [vmem:[%s614_s5 + $0x20] sm:$0xff] %vm39_vm1, %v396_v45 }
 0x332   :  { %v336_v47 = vld [vmem:[#allocation3 + $0x28] sm:$0xff] }
 0x333   :  { %437 = vmatmul.msk.f32.vlgmr.msra.gmra.mxu1 %vm28_vm2, %v331_v46  ;;  %442 = vmatmul.msk.f32.gmra.mxu3 %vm28_vm2, %v336_v47 }
 0x33b   :  { %438 = vmatmul.msk.f32.gmra.mxu1 %vm28_vm2, %v332_v48 }
 0x343   :  { %439 = vmatmul.msk.f32.gmra.mxu1 %vm28_vm2, %v333_v49 }
 0x34b   :  { %440 = vmatmul.msk.f32.gmra.mxu1 %vm28_vm2, %v334_v50 }
 0x3a8   :  { %v300_v53 = vpop.f32.mrf.mxu1 }
 0x3a9   :  { %v301_v54 = vadd.f32 %v300_v53, %v279_v52 }
 0x3ab   :  { %303 = vst.msk [vmem:[#allocation3 + $0x30] sm:$0xff] %vm28_vm2, %v301_v54  ;;  %436 = vmatmul.msk.f32.vlgmr.msra.gmra.mxu2 %vm28_vm2, %v301_v54 }
 0x3b0   :  { %v384_v55 = vpop.f32.mrf.mxu1 }
 0x3b1   :  { %408 = vst.msk [vmem:[%s614_s5] sm:$0xff] %vm39_vm1, %v384_v55 }
 0x3b2   :  { %v337_v56 = vld [vmem:[#allocation3 + $0x30] sm:$0xff] }
 0x3b3   :  { %443 = vmatmul.msk.f32.gmra.mxu3 %vm28_vm2, %v337_v56 }
 0x3b6   :  { %v399_v57 = vpop.f32.mrf.mxu3 }
 0x3b7   :  { %413 = vst.msk [vmem:[%s614_s5 + $0x28] sm:$0xff] %vm39_vm1, %v399_v57 }
 0x3b8   :  { %v387_v58 = vpop.f32.mrf.mxu1 }
 0x3b9   :  { %409 = vst.msk [vmem:[%s614_s5 + $0x8] sm:$0xff] %vm39_vm1, %v387_v58 }
 0x3c0   :  { %v390_v59 = vpop.f32.mrf.mxu1 }
 0x3c1   :  { %410 = vst.msk [vmem:[%s614_s5 + $0x10] sm:$0xff] %vm39_vm1, %v390_v59 }
 0x3c8   :  { %v393_v60 = vpop.f32.mrf.mxu1 }
 0x3c9   :  { %411 = vst.msk [vmem:[%s614_s5 + $0x18] sm:$0xff] %vm39_vm1, %v393_v60 }
 0x42e   :  { %v326_v62 = vpop.f32.mrf.mxu2 }
 0x42f   :  { %v327_v63 = vadd.f32 %v326_v62, %v305_v61 }
 0x431   :  { %329 = vst.msk [vmem:[#allocation3 + $0x38] sm:$0xff] %vm28_vm2, %v327_v63 }
 0x432   :  { %330 = vst.msk [vmem:[#allocation2] sm:$0xff] %vm28_vm2, %v327_v63 }
 0x436   :  { %v402_v0 = vpop.f32.mrf.mxu3 }
 0x437   :  { %414 = vst.msk [vmem:[%s614_s5 + $0x30] sm:$0xff] %vm39_vm1, %v402_v0 }
 0x438   :  { %v338_v1 = vld [vmem:[#allocation3 + $0x38] sm:$0xff] }
 0x439   :  { %444 = vmatmul.msk.f32.gmra.mxu3 %vm28_vm2, %v338_v1 }
 0x4bc   :  { %v405_v2 = vpop.f32.mrf.mxu3 }
 0x4bd   :  { %415 = vst.msk [vmem:[%s614_s5 + $0x38] sm:$0xff] %vm39_vm1, %v405_v2 }

</bundles_post_ra>
